<compile_context>
chip_gen: v6e
topology: v6e:2x2x1
jax: 0.10.0
libtpu: 0.0.40
codegen_flags: <defaults>
</compile_context>

<pallas_src>
import functools

import jax
import jax.numpy as jnp
from jax.experimental import pallas as pl
from jax.experimental.pallas import tpu as pltpu

C_IN = 512
C_OUT = 256
EPS = 1e-5


def _round_up(v, m):
    return ((v + m - 1) // m) * m


def _fused_conv1x1_bn_relu_kernel(x_ref, w_ref, b_ref, o_ref, *, compute_dtype):
    # x_ref: (C_IN, t)     activation tile in its HBM dtype (cast after DMA)
    # w_ref: (C_OUT, C_IN) conv weight with BN scale folded in (compute_dtype)
    # b_ref: (C_OUT, 1)    folded conv-bias + BN shift (f32)
    # o_ref: (C_OUT, t)    out_dtype
    x = x_ref[...].astype(compute_dtype)          # in-kernel cast: no extra HBM pass
    acc = jnp.dot(w_ref[...], x, preferred_element_type=jnp.float32)
    y = acc + b_ref[...]                          # lane-broadcast per-channel bias
    o_ref[...] = jnp.maximum(y, 0.0).astype(o_ref.dtype)


def _pick_tile(extent, t_cap):
    """Lane-dense, balanced spatial tile.

    extent <= t_cap  -> single full-extent block (always legal).
    extent  > t_cap  -> smallest number of steps at t_cap, then the tile is
                        re-balanced to a multiple of 128 so the last block is
                        near-full instead of a ragged tail.
    """
    if extent <= t_cap:
        return extent
    n_steps = pl.cdiv(extent, t_cap)
    return min(t_cap, _round_up(pl.cdiv(extent, n_steps), 128))


def _vmem_limit_bytes(t, x_itemsize, w_itemsize, out_itemsize):
    x_tile = C_IN * t * x_itemsize
    o_tile = C_OUT * t * out_itemsize
    w_blk = C_OUT * C_IN * w_itemsize
    b_blk = C_OUT * 4
    # x2 for double-buffering (weight/bias blocks counted conservatively even
    # though their index_map is constant) + headroom for Mosaic scratch.
    needed = 2 * (x_tile + o_tile + w_blk + b_blk) + (2 << 20)
    # Floor at the v5e default scoped limit; ceiling well under v7x's 64 MiB
    # physical VMEM (tightest of the three generations).
    return int(min(max(needed, 16 << 20), 48 << 20))


@functools.partial(jax.jit,
                   static_argnames=("t_hw", "compute_dtype", "out_dtype"))
def modulation_layer3_forward(x_nchw, conv_w, conv_b, bn_gamma, bn_beta,
                              bn_mean, bn_var, *, t_hw=2048,
                              compute_dtype=jnp.bfloat16, out_dtype=None):
    """x_nchw: (..., 512, H, W). Returns (N, 256, H, W).

    compute_dtype: MXU dtype (default bf16 perf path; use f32 for validation).
    out_dtype: output dtype; defaults to compute_dtype on the reduced-precision
               path and to x's dtype on the f32 path.
    """
    C, H, W = x_nchw.shape[-3], x_nchw.shape[-2], x_nchw.shape[-1]
    assert C == C_IN, C
    assert t_hw % 128 == 0, t_hw

    if out_dtype is None:
        out_dtype = (x_nchw.dtype if jnp.dtype(compute_dtype) == jnp.float32
                     else compute_dtype)

    # view(-1, C, H, W); merge spatial dims (free reshape, NCHW layout kept).
    x = x_nchw.reshape(-1, C_IN, H * W)
    N, _, HW = x.shape

    # Fold conv bias + eval-mode BatchNorm:
    #   y = ((x conv W + conv_b) - mean)/sqrt(var+eps)*gamma + beta
    #     = x conv (W*s) + (conv_b*s + beta - mean*s),  s = gamma/sqrt(var+eps)
    s = (bn_gamma / jnp.sqrt(bn_var + EPS)).astype(jnp.float32)
    bias = (conv_b * s + bn_beta - bn_mean * s).reshape(C_OUT, 1)
    bias = bias.astype(jnp.float32)                       # epilogue stays f32
    # Weight pre-arranged as (C_OUT, C_IN) MXU-LHS here (the BN fold already
    # materializes it), so the resident block needs no per-step re-layout.
    w = (conv_w.reshape(C_OUT, C_IN).astype(jnp.float32)
         * s[:, None]).astype(compute_dtype)
    # NOTE: x is deliberately NOT cast here — the tile is cast in-kernel.

    # Layout selection: small / non-lane-dense HW folds batch into the lane
    # axis (one-off transpose of a tiny tensor) so stores are lane-dense.
    batch_fold = HW < 256
    if batch_fold:
        x_k = jnp.transpose(x, (1, 0, 2)).reshape(1, C_IN, N * HW)
    else:
        x_k = x
    Nk, _, M = x_k.shape

    x_sz = jnp.dtype(x_k.dtype).itemsize
    o_sz = jnp.dtype(out_dtype).itemsize
    w_sz = jnp.dtype(compute_dtype).itemsize

    # Hard-cap the tile so the double-buffered working set never exceeds a
    # budget that is comfortable on every generation (v7x 64 MiB physical is
    # the binding constraint) — do not blindly reuse a v6e-sized tile.
    per_col = 2 * (C_IN * x_sz + C_OUT * o_sz)
    t_budget = max(128, ((40 << 20) // per_col) // 128 * 128)
    t = _pick_tile(M, min(t_hw, t_budget))
    grid = (Nk, pl.cdiv(M, t))

    kernel = functools.partial(_fused_conv1x1_bn_relu_kernel,
                               compute_dtype=compute_dtype)

    out = pl.pallas_call(
        kernel,
        out_shape=jax.ShapeDtypeStruct((Nk, C_OUT, M), out_dtype),
        grid_spec=pltpu.PrefetchScalarGridSpec(
            num_scalar_prefetch=0,
            grid=grid,
            in_specs=[
                # (None, ...) squeezes the batch dim: kernel sees (C_IN, t).
                pl.BlockSpec((None, C_IN, t), lambda n, j: (n, 0, j)),
                pl.BlockSpec((C_OUT, C_IN), lambda n, j: (0, 0)),
                pl.BlockSpec((C_OUT, 1), lambda n, j: (0, 0)),
            ],
            out_specs=pl.BlockSpec((None, C_OUT, t), lambda n, j: (n, 0, j)),
        ),
        compiler_params=pltpu.CompilerParams(
            dimension_semantics=("parallel", "parallel"),
            vmem_limit_bytes=_vmem_limit_bytes(t, x_sz, w_sz, o_sz)),
    )(x_k, w, bias)

    if batch_fold:
        # (1, C_OUT, N*HW) -> (N, C_OUT, HW): tiny tensor, negligible cost.
        out = jnp.transpose(out.reshape(C_OUT, N, HW), (1, 0, 2))
    return out.reshape(N, C_OUT, H, W)


def _reference(x_nchw, conv_w, conv_b, bn_gamma, bn_beta, bn_mean, bn_var):
    """Plain-JAX reference (f32, NCHW) for correctness checking."""
    C, H, W = x_nchw.shape[-3], x_nchw.shape[-2], x_nchw.shape[-1]
    x = x_nchw.reshape(-1, C, H, W)
    w = conv_w.reshape(C_OUT, C_IN)
    y = jnp.einsum("oc,nchw->nohw", w, x) + conv_b[None, :, None, None]
    s = bn_gamma / jnp.sqrt(bn_var + EPS)
    y = (y - bn_mean[None, :, None, None]) * s[None, :, None, None] \
        + bn_beta[None, :, None, None]
    return jnp.maximum(y, 0.0)


if __name__ == "__main__":
    key = jax.random.PRNGKey(0)
    k_x, k_w, k_b, k_g, k_be, k_m, k_v = jax.random.split(key, 7)

    # Small shapes consistent with the module: batch=2, 512 in-channels, 8x8.
    N, H, W = 2, 8, 8
    x = jax.random.normal(k_x, (N, C_IN, H, W), dtype=jnp.float32)

    conv_w = jax.random.normal(k_w, (C_OUT, C_IN, 1, 1), jnp.float32) * 0.02
    conv_b = jax.random.normal(k_b, (C_OUT,), jnp.float32) * 0.1
    bn_gamma = 1.0 + 0.1 * jax.random.normal(k_g, (C_OUT,), jnp.float32)
    bn_beta = 0.1 * jax.random.normal(k_be, (C_OUT,), jnp.float32)
    bn_mean = 0.05 * jax.random.normal(k_m, (C_OUT,), jnp.float32)
    bn_var = jnp.abs(jax.random.normal(k_v, (C_OUT,), jnp.float32)) + 0.5
    params = (conv_w, conv_b, bn_gamma, bn_beta, bn_mean, bn_var)

    ref = _reference(x, *params)

    # f32 numerics-validation path (HW=64 -> batch-fold, lane-dense 128-wide).
    out_f32 = modulation_layer3_forward(x, *params,
                                        compute_dtype=jnp.float32,
                                        out_dtype=jnp.float32)
    out_f32 = jax.block_until_ready(out_f32)
    assert out_f32.shape == (N, C_OUT, H, W), out_f32.shape
    assert out_f32.dtype == jnp.float32
    assert jnp.allclose(out_f32, ref, atol=1e-4, rtol=1e-4), \
        float(jnp.max(jnp.abs(out_f32 - ref)))

    # Default perf path: bf16 MXU compute (in-kernel cast of the f32 tile),
    # bf16 output stream. Looser tolerance from bf16 weights/activations.
    out_bf16 = modulation_layer3_forward(x, *params)
    out_bf16 = jax.block_until_ready(out_bf16)
    assert out_bf16.shape == (N, C_OUT, H, W), out_bf16.shape
    assert out_bf16.dtype == jnp.bfloat16
    assert jnp.allclose(out_bf16.astype(jnp.float32), ref,
                        atol=5e-2, rtol=5e-2), \
        float(jnp.max(jnp.abs(out_bf16.astype(jnp.float32) - ref)))

    # Second small case exercising the per-batch spatial-tiling path
    # (HW = 256 -> lane-dense without batch folding).
    H2 = W2 = 16
    x2 = jax.random.normal(k_x, (N, C_IN, H2, W2), dtype=jnp.float32)
    ref2 = _reference(x2, *params)
    out2 = modulation_layer3_forward(x2, *params,
                                     compute_dtype=jnp.float32,
                                     out_dtype=jnp.float32)
    out2 = jax.block_until_ready(out2)
    assert out2.shape == (N, C_OUT, H2, W2), out2.shape
    assert jnp.allclose(out2, ref2, atol=1e-4, rtol=1e-4), \
        float(jnp.max(jnp.abs(out2 - ref2)))

    print("KERNEL_OK")
</pallas_src>

<mosaic_0001>
module attributes {stable_mosaic.version = 11 : i64} {
  func.func @_fused_conv1x1_bn_relu_kernel(%arg0: i32, %arg1: i32, %arg2: memref<1x512x128xf32, #tpu.memory_space<vmem>>, %arg3: memref<256x512xf32, #tpu.memory_space<vmem>>, %arg4: memref<256x1xf32, #tpu.memory_space<vmem>>, %arg5: memref<1x256x128xf32, #tpu.memory_space<vmem>>) attributes {dimension_semantics = [#tpu.dimension_semantics<parallel>, #tpu.dimension_semantics<parallel>], iteration_bounds = array<i64: 1, 1>, scalar_prefetch = 0 : i64, scratch_operands = 0 : i64, tpu.core_type = #tpu.core_type<tc>, window_params = [{transform_indices = @transform_0, window_bounds = array<i64: 1, 512, 128>}, {pipeline_mode = #tpu.pipeline_mode<synchronous>, transform_indices = @transform_1, window_bounds = array<i64: 256, 512>}, {pipeline_mode = #tpu.pipeline_mode<synchronous>, transform_indices = @transform_2, window_bounds = array<i64: 256, 1>}, {transform_indices = @transform_3, window_bounds = array<i64: 1, 256, 128>}]} {
    %c0 = arith.constant 0 : index
    %c0_0 = arith.constant 0 : index
    %c0_1 = arith.constant 0 : index
    %0 = vector.load %arg2[%c0, %c0_0, %c0_1] : memref<1x512x128xf32, #tpu.memory_space<vmem>>, vector<1x512x128xf32>
    %1 = vector.shape_cast %0 : vector<1x512x128xf32> to vector<512x128xf32>
    %c0_2 = arith.constant 0 : index
    %c0_3 = arith.constant 0 : index
    %2 = vector.load %arg3[%c0_2, %c0_3] : memref<256x512xf32, #tpu.memory_space<vmem>>, vector<256x512xf32>
    %cst = arith.constant dense<0.000000e+00> : vector<256x128xf32>
    %3 = tpu.matmul %2, %1, %cst {dimension_numbers = #tpu.dot_dimension_numbers<[1], [0], [0], [1], [0, 0, 1, 1], [], []>} : vector<256x512xf32>, vector<512x128xf32>, vector<256x128xf32> -> vector<256x128xf32>
    %c0_4 = arith.constant 0 : index
    %c0_5 = arith.constant 0 : index
    %4 = vector.load %arg4[%c0_4, %c0_5] : memref<256x1xf32, #tpu.memory_space<vmem>>, vector<256x1xf32>
    %5 = vector.broadcast %4 : vector<256x1xf32> to vector<256x128xf32>
    %6 = arith.addf %3, %5 : vector<256x128xf32>
    %cst_6 = arith.constant 0.000000e+00 : f32
    %7 = vector.broadcast %cst_6 : f32 to vector<256x128xf32>
    %8 = arith.maximumf %6, %7 : vector<256x128xf32>
    %c0_7 = arith.constant 0 : index
    %c0_8 = arith.constant 0 : index
    %c0_9 = arith.constant 0 : index
    %9 = vector.load %arg5[%c0_7, %c0_8, %c0_9] : memref<1x256x128xf32, #tpu.memory_space<vmem>>, vector<1x256x128xf32>
    %10 = vector.shape_cast %9 : vector<1x256x128xf32> to vector<256x128xf32>
    %11 = vector.shape_cast %8 : vector<256x128xf32> to vector<1x256x128xf32>
    tpu.vector_store %arg5[%c0_7, %c0_8, %c0_9], %11 {strides = array<i32>} : memref<1x256x128xf32, #tpu.memory_space<vmem>>, vector<1x256x128xf32>,
    return
  }
  func.func @transform_0(%arg0: i32, %arg1: i32) -> (i32, i32, i32) {
    %c0_i32 = arith.constant 0 : i32
    %c0_i32_0 = arith.constant 0 : i32
    return %arg0, %c0_i32, %arg1 : i32, i32, i32
  }
  func.func @transform_1(%arg0: i32, %arg1: i32) -> (i32, i32) {
    %c0_i32 = arith.constant 0 : i32
    %c0_i32_0 = arith.constant 0 : i32
    %c0_i32_1 = arith.constant 0 : i32
    return %c0_i32, %c0_i32_0 : i32, i32
  }
  func.func @transform_2(%arg0: i32, %arg1: i32) -> (i32, i32) {
    %c0_i32 = arith.constant 0 : i32
    %c0_i32_0 = arith.constant 0 : i32
    %c0_i32_1 = arith.constant 0 : i32
    return %c0_i32, %c0_i32_0 : i32, i32
  }
  func.func @transform_3(%arg0: i32, %arg1: i32) -> (i32, i32, i32) {
    %c0_i32 = arith.constant 0 : i32
    %c0_i32_0 = arith.constant 0 : i32
    return %arg0, %c0_i32, %arg1 : i32, i32, i32
  }
}

</mosaic_0001>

<bundles_post_ra>
// kernel: modulation_layer3_forward.1
= control target key start
LH: loop header
LB: loop body
LE: loop exit
PB: predicated region body
PF: predicated region fallthrough
CT: control target
= control target key end

     0   :  { %v920_v0 = vmov 0.0   ;;  %s1774_s0 = inlined_call_operand.vmem [shape: f32[1,512,128], index: 0, kind: input, shape index: {}]   ;;  %s1775_s1 = inlined_call_operand.vmem [shape: f32[256,512], index: 1, kind: input, shape index: {}]   ;;  %s1776_s2 = inlined_call_operand.vmem [shape: f32[256,1], index: 2, kind: input, shape index: {}]   ;;  %s1777_s3 = inlined_call_operand.vmem [shape: f32[1,256,128], index: 3, kind: output, shape index: {}]  }
   0x1   :  { %398 = vmatprep.subr.mxu0 %v920_v0  ;;  %623 = vmatprep.subr.mxu1 %v920_v0  ;;  %v29_v1 = vld [vmem:[%s1774_s0 + $0x78] sm:$0xff]  ;;  %v28_v3 = vld [vmem:[%s1774_s0 + $0x70] sm:$0xff]  ;;  %v27_v5 = vld [vmem:[%s1774_s0 + $0x68] sm:$0xff] }
   0x2   :  { %v61_v2 = vld [vmem:[%s1774_s0 + $0x178] sm:$0xff]  ;;  %399 = vmatpush1.msra.mxu0 %v29_v1  ;;  %v60_v4 = vld [vmem:[%s1774_s0 + $0x170] sm:$0xff]  ;;  %v59_v6 = vld [vmem:[%s1774_s0 + $0x168] sm:$0xff] }
   0x3   :  { %624 = vmatpush1.msra.mxu1 %v61_v2  ;;  %400 = vmatprep.subr.mxu0 %v920_v0  ;;  %v26_v7 = vld [vmem:[%s1774_s0 + $0x60] sm:$0xff]  ;;  %v25_v9 = vld [vmem:[%s1774_s0 + $0x58] sm:$0xff]  ;;  %v24_v11 = vld [vmem:[%s1774_s0 + $0x50] sm:$0xff] }
   0x4   :  { %625 = vmatprep.subr.mxu1 %v920_v0  ;;  %401 = vmatpush1.msra.mxu0 %v28_v3  ;;  %v58_v8 = vld [vmem:[%s1774_s0 + $0x160] sm:$0xff]  ;;  %v57_v10 = vld [vmem:[%s1774_s0 + $0x158] sm:$0xff]  ;;  %v56_v12 = vld [vmem:[%s1774_s0 + $0x150] sm:$0xff] }
   0x5   :  { %626 = vmatpush1.msra.mxu1 %v60_v4  ;;  %402 = vmatprep.subr.mxu0 %v920_v0  ;;  %v23_v13 = vld [vmem:[%s1774_s0 + $0x48] sm:$0xff]  ;;  %v22_v15 = vld [vmem:[%s1774_s0 + $0x40] sm:$0xff]  ;;  %v21_v17 = vld [vmem:[%s1774_s0 + $0x38] sm:$0xff] }
   0x6   :  { %627 = vmatprep.subr.mxu1 %v920_v0  ;;  %403 = vmatpush1.msra.mxu0 %v27_v5  ;;  %v55_v14 = vld [vmem:[%s1774_s0 + $0x148] sm:$0xff]  ;;  %v54_v16 = vld [vmem:[%s1774_s0 + $0x140] sm:$0xff]  ;;  %v53_v18 = vld [vmem:[%s1774_s0 + $0x138] sm:$0xff] }
   0x7   :  { %628 = vmatpush1.msra.mxu1 %v59_v6  ;;  %404 = vmatprep.subr.mxu0 %v920_v0  ;;  %v20_v19 = vld [vmem:[%s1774_s0 + $0x30] sm:$0xff]  ;;  %v19_v21 = vld [vmem:[%s1774_s0 + $0x28] sm:$0xff]  ;;  %v18_v23 = vld [vmem:[%s1774_s0 + $0x20] sm:$0xff] }
   0x8   :  { %629 = vmatprep.subr.mxu1 %v920_v0  ;;  %405 = vmatpush1.msra.mxu0 %v26_v7  ;;  %v52_v20 = vld [vmem:[%s1774_s0 + $0x130] sm:$0xff]  ;;  %v51_v22 = vld [vmem:[%s1774_s0 + $0x128] sm:$0xff]  ;;  %v50_v24 = vld [vmem:[%s1774_s0 + $0x120] sm:$0xff] }
   0x9   :  { %630 = vmatpush1.msra.mxu1 %v58_v8  ;;  %406 = vmatprep.subr.mxu0 %v920_v0  ;;  %v17_v25 = vld [vmem:[%s1774_s0 + $0x18] sm:$0xff]  ;;  %v16_v27 = vld [vmem:[%s1774_s0 + $0x10] sm:$0xff]  ;;  %v15_v29 = vld [vmem:[%s1774_s0 + $0x8] sm:$0xff] }
   0xa   :  { %631 = vmatprep.subr.mxu1 %v920_v0  ;;  %407 = vmatpush1.msra.mxu0 %v25_v9  ;;  %v49_v26 = vld [vmem:[%s1774_s0 + $0x118] sm:$0xff]  ;;  %v48_v28 = vld [vmem:[%s1774_s0 + $0x110] sm:$0xff]  ;;  %v47_v30 = vld [vmem:[%s1774_s0 + $0x108] sm:$0xff] }
   0xb   :  { %632 = vmatpush1.msra.mxu1 %v57_v10  ;;  %408 = vmatprep.subr.mxu0 %v920_v0  ;;  %v14_v31 = vld [vmem:[%s1774_s0] sm:$0xff]  ;;  %v45_v33 = vld [vmem:[%s1774_s0 + $0xf8] sm:$0xff]  ;;  %v44_v35 = vld [vmem:[%s1774_s0 + $0xf0] sm:$0xff] }
   0xc   :  { %633 = vmatprep.subr.mxu1 %v920_v0  ;;  %409 = vmatpush1.msra.mxu0 %v24_v11  ;;  %v46_v32 = vld [vmem:[%s1774_s0 + $0x100] sm:$0xff]  ;;  %v77_v34 = vld [vmem:[%s1774_s0 + $0x1f8] sm:$0xff]  ;;  %v76_v36 = vld [vmem:[%s1774_s0 + $0x1f0] sm:$0xff] }
   0xd   :  { %634 = vmatpush1.msra.mxu1 %v56_v12  ;;  %410 = vmatprep.subr.mxu0 %v920_v0  ;;  %v43_v37 = vld [vmem:[%s1774_s0 + $0xe8] sm:$0xff]  ;;  %v42_v39 = vld [vmem:[%s1774_s0 + $0xe0] sm:$0xff]  ;;  %v41_v41 = vld [vmem:[%s1774_s0 + $0xd8] sm:$0xff] }
   0xe   :  { %635 = vmatprep.subr.mxu1 %v920_v0  ;;  %411 = vmatpush1.msra.mxu0 %v23_v13  ;;  %v75_v38 = vld [vmem:[%s1774_s0 + $0x1e8] sm:$0xff]  ;;  %v74_v40 = vld [vmem:[%s1774_s0 + $0x1e0] sm:$0xff]  ;;  %v73_v42 = vld [vmem:[%s1774_s0 + $0x1d8] sm:$0xff]  ;;  %v921_v13 = vmov 0  }
   0xf   :  { %636 = vmatpush1.msra.mxu1 %v55_v14  ;;  %412 = vmatprep.subr.mxu0 %v920_v0  ;;  %v40_v43 = vld [vmem:[%s1774_s0 + $0xd0] sm:$0xff]  ;;  %v39_v45 = vld [vmem:[%s1774_s0 + $0xc8] sm:$0xff]  ;;  %v38_v47 = vld [vmem:[%s1774_s0 + $0xc0] sm:$0xff] }
  0x10   :  { %637 = vmatprep.subr.mxu1 %v920_v0  ;;  %413 = vmatpush1.msra.mxu0 %v22_v15  ;;  %v72_v44 = vld [vmem:[%s1774_s0 + $0x1d0] sm:$0xff]  ;;  %v71_v46 = vld [vmem:[%s1774_s0 + $0x1c8] sm:$0xff]  ;;  %v70_v48 = vld [vmem:[%s1774_s0 + $0x1c0] sm:$0xff] }
  0x11   :  { %638 = vmatpush1.msra.mxu1 %v54_v16  ;;  %414 = vmatprep.subr.mxu0 %v920_v0  ;;  %v37_v49 = vld [vmem:[%s1774_s0 + $0xb8] sm:$0xff]  ;;  %v36_v51 = vld [vmem:[%s1774_s0 + $0xb0] sm:$0xff]  ;;  %v35_v53 = vld [vmem:[%s1774_s0 + $0xa8] sm:$0xff] }
  0x12   :  { %639 = vmatprep.subr.mxu1 %v920_v0  ;;  %415 = vmatpush1.msra.mxu0 %v21_v17  ;;  %v69_v50 = vld [vmem:[%s1774_s0 + $0x1b8] sm:$0xff]  ;;  %v68_v52 = vld [vmem:[%s1774_s0 + $0x1b0] sm:$0xff]  ;;  %v67_v54 = vld [vmem:[%s1774_s0 + $0x1a8] sm:$0xff] }
  0x13   :  { %640 = vmatpush1.msra.mxu1 %v53_v18  ;;  %416 = vmatprep.subr.mxu0 %v920_v0  ;;  %v34_v55 = vld [vmem:[%s1774_s0 + $0xa0] sm:$0xff]  ;;  %v33_v57 = vld [vmem:[%s1774_s0 + $0x98] sm:$0xff]  ;;  %v32_v59 = vld [vmem:[%s1774_s0 + $0x90] sm:$0xff] }
  0x14   :  { %641 = vmatprep.subr.mxu1 %v920_v0  ;;  %417 = vmatpush1.msra.mxu0 %v20_v19  ;;  %v66_v56 = vld [vmem:[%s1774_s0 + $0x1a0] sm:$0xff]  ;;  %v65_v58 = vld [vmem:[%s1774_s0 + $0x198] sm:$0xff]  ;;  %v64_v60 = vld [vmem:[%s1774_s0 + $0x190] sm:$0xff] }
  0x15   :  { %642 = vmatpush1.msra.mxu1 %v52_v20  ;;  %418 = vmatprep.subr.mxu0 %v920_v0  ;;  %v31_v61 = vld [vmem:[%s1774_s0 + $0x88] sm:$0xff]  ;;  %v30_v63 = vld [vmem:[%s1774_s0 + $0x80] sm:$0xff]  ;;  %v81_v3 = vld [vmem:[%s1775_s1 + $0x18] sm:$0xff] }
  0x16   :  { %643 = vmatprep.subr.mxu1 %v920_v0  ;;  %419 = vmatpush1.msra.mxu0 %v19_v21  ;;  %v63_v62 = vld [vmem:[%s1774_s0 + $0x188] sm:$0xff]  ;;  %v62_v2 = vld [vmem:[%s1774_s0 + $0x180] sm:$0xff]  ;;  %v80_v5 = vld [vmem:[%s1775_s1 + $0x10] sm:$0xff] }
  0x17   :  { %644 = vmatpush1.msra.mxu1 %v51_v22  ;;  %420 = vmatprep.subr.mxu0 %v920_v0  ;;  %v79_v1 = vld [vmem:[%s1775_s1 + $0x8] sm:$0xff]  ;;  %v78_v4 = vld [vmem:[%s1775_s1] sm:$0xff]  ;;  %v85_v7 = vld [vmem:[%s1775_s1 + $0x38] sm:$0xff] }
  0x18   :  { %645 = vmatprep.subr.mxu1 %v920_v0  ;;  %421 = vmatpush1.msra.mxu0 %v18_v23  ;;  %v83_v6 = vld [vmem:[%s1775_s1 + $0x28] sm:$0xff]  ;;  %v208_v8 = vld [vmem:[%s1776_s2 + $0x10] sm:$0xff]  ;;  %v82_v9 = vld [vmem:[%s1775_s1 + $0x20] sm:$0xff] }
  0x19   :  { %646 = vmatpush1.msra.mxu1 %v50_v24  ;;  %422 = vmatprep.subr.mxu0 %v920_v0  ;;  %v84_v10 = vld [vmem:[%s1775_s1 + $0x30] sm:$0xff]  ;;  %v87_v11 = vld [vmem:[%s1775_s1 + $0x48] sm:$0xff]  ;;  %v89_v12 = vld [vmem:[%s1775_s1 + $0x58] sm:$0xff] }
  0x1a   :  { %647 = vmatprep.subr.mxu1 %v920_v0  ;;  %423 = vmatpush1.msra.mxu0 %v17_v25  ;;  %v207_v14 = vld [vmem:[%s1776_s2 + $0x8] sm:$0xff]  ;;  %v209_v15 = vld [vmem:[%s1776_s2 + $0x18] sm:$0xff]  ;;  %v86_v16 = vld [vmem:[%s1775_s1 + $0x40] sm:$0xff] }
  0x1b   :  { %648 = vmatpush1.msra.mxu1 %v49_v26  ;;  %424 = vmatprep.subr.mxu0 %v920_v0  ;;  %v88_v17 = vld [vmem:[%s1775_s1 + $0x50] sm:$0xff]  ;;  %v91_v18 = vld [vmem:[%s1775_s1 + $0x68] sm:$0xff]  ;;  %v93_v19 = vld [vmem:[%s1775_s1 + $0x78] sm:$0xff] }
  0x1c   :  { %649 = vmatprep.subr.mxu1 %v920_v0  ;;  %425 = vmatpush1.msra.mxu0 %v16_v27  ;;  %v211_v20 = vld [vmem:[%s1776_s2 + $0x28] sm:$0xff]  ;;  %v210_v21 = vld [vmem:[%s1776_s2 + $0x20] sm:$0xff]  ;;  %v92_v23 = vld [vmem:[%s1775_s1 + $0x70] sm:$0xff] }
  0x1d   :  { %650 = vmatpush1.msra.mxu1 %v48_v28  ;;  %426 = vmatprep.subr.mxu0 %v920_v0  ;;  %v90_v22 = vld [vmem:[%s1775_s1 + $0x60] sm:$0xff]  ;;  %v95_v24 = vld [vmem:[%s1775_s1 + $0x88] sm:$0xff]  ;;  %v97_v25 = vld [vmem:[%s1775_s1 + $0x98] sm:$0xff] }
  0x1e   :  { %651 = vmatprep.subr.mxu1 %v920_v0  ;;  %427 = vmatpush1.msra.mxu0 %v15_v29  ;;  %v213_v26 = vld [vmem:[%s1776_s2 + $0x38] sm:$0xff]  ;;  %v212_v27 = vld [vmem:[%s1776_s2 + $0x30] sm:$0xff]  ;;  %v94_v28 = vld [vmem:[%s1775_s1 + $0x80] sm:$0xff] }
  0x1f   :  { %652 = vmatpush1.msra.mxu1 %v47_v30  ;;  %428 = vmatprep.subr.mxu0 %v920_v0  ;;  %v96_v29 = vld [vmem:[%s1775_s1 + $0x90] sm:$0xff]  ;;  %v99_v30 = vld [vmem:[%s1775_s1 + $0xa8] sm:$0xff] }
  0x20   :  { %653 = vmatprep.subr.mxu1 %v920_v0  ;;  %429 = vmatpush1.msra.mxu0 %v14_v31  ;;  %v101_v31 = vld [vmem:[%s1775_s1 + $0xb8] sm:$0xff] }
  0x21   :  { %654 = vmatpush1.msra.mxu1 %v46_v32  ;;  %430 = vmatprep.subr.mxu0 %v920_v0  ;;  %v215_v32 = vld [vmem:[%s1776_s2 + $0x48] sm:$0xff] }
  0x22   :  { %655 = vmatprep.subr.mxu1 %v920_v0  ;;  %431 = vmatpush2.msra.mxu0 %v45_v33  ;;  %v214_v33 = vld [vmem:[%s1776_s2 + $0x40] sm:$0xff] }
  0x23   :  { %656 = vmatpush2.msra.mxu1 %v77_v34  ;;  %432 = vmatprep.subr.mxu0 %v920_v0  ;;  %v98_v34 = vld [vmem:[%s1775_s1 + $0xa0] sm:$0xff] }
  0x24   :  { %657 = vmatprep.subr.mxu1 %v920_v0  ;;  %433 = vmatpush2.msra.mxu0 %v44_v35  ;;  %v100_v35 = vld [vmem:[%s1775_s1 + $0xb0] sm:$0xff] }
  0x25   :  { %658 = vmatpush2.msra.mxu1 %v76_v36  ;;  %434 = vmatprep.subr.mxu0 %v920_v0  ;;  %v103_v36 = vld [vmem:[%s1775_s1 + $0xc8] sm:$0xff] }
  0x26   :  { %659 = vmatprep.subr.mxu1 %v920_v0  ;;  %435 = vmatpush2.msra.mxu0 %v43_v37  ;;  %v105_v37 = vld [vmem:[%s1775_s1 + $0xd8] sm:$0xff] }
  0x27   :  { %660 = vmatpush2.msra.mxu1 %v75_v38  ;;  %436 = vmatprep.subr.mxu0 %v920_v0  ;;  %v217_v38 = vld [vmem:[%s1776_s2 + $0x58] sm:$0xff] }
  0x28   :  { %661 = vmatprep.subr.mxu1 %v920_v0  ;;  %437 = vmatpush2.msra.mxu0 %v42_v39  ;;  %v216_v39 = vld [vmem:[%s1776_s2 + $0x50] sm:$0xff] }
  0x29   :  { %662 = vmatpush2.msra.mxu1 %v74_v40  ;;  %438 = vmatprep.subr.mxu0 %v920_v0  ;;  %v102_v40 = vld [vmem:[%s1775_s1 + $0xc0] sm:$0xff] }
  0x2a   :  { %663 = vmatprep.subr.mxu1 %v920_v0  ;;  %439 = vmatpush2.msra.mxu0 %v41_v41  ;;  %v104_v41 = vld [vmem:[%s1775_s1 + $0xd0] sm:$0xff] }
  0x2b   :  { %664 = vmatpush2.msra.mxu1 %v73_v42  ;;  %440 = vmatprep.subr.mxu0 %v920_v0  ;;  %v107_v42 = vld [vmem:[%s1775_s1 + $0xe8] sm:$0xff] }
  0x2c   :  { %665 = vmatprep.subr.mxu1 %v920_v0  ;;  %441 = vmatpush2.msra.mxu0 %v40_v43  ;;  %v109_v43 = vld [vmem:[%s1775_s1 + $0xf8] sm:$0xff] }
  0x2d   :  { %666 = vmatpush2.msra.mxu1 %v72_v44  ;;  %442 = vmatprep.subr.mxu0 %v920_v0  ;;  %v219_v44 = vld [vmem:[%s1776_s2 + $0x68] sm:$0xff] }
  0x2e   :  { %667 = vmatprep.subr.mxu1 %v920_v0  ;;  %443 = vmatpush2.msra.mxu0 %v39_v45  ;;  %v218_v45 = vld [vmem:[%s1776_s2 + $0x60] sm:$0xff] }
  0x2f   :  { %668 = vmatpush2.msra.mxu1 %v71_v46  ;;  %444 = vmatprep.subr.mxu0 %v920_v0  ;;  %v106_v46 = vld [vmem:[%s1775_s1 + $0xe0] sm:$0xff] }
  0x30   :  { %669 = vmatprep.subr.mxu1 %v920_v0  ;;  %445 = vmatpush2.msra.mxu0 %v38_v47  ;;  %v108_v47 = vld [vmem:[%s1775_s1 + $0xf0] sm:$0xff] }
  0x31   :  { %670 = vmatpush2.msra.mxu1 %v70_v48  ;;  %446 = vmatprep.subr.mxu0 %v920_v0  ;;  %v111_v48 = vld [vmem:[%s1775_s1 + $0x108] sm:$0xff] }
  0x32   :  { %671 = vmatprep.subr.mxu1 %v920_v0  ;;  %447 = vmatpush2.msra.mxu0 %v37_v49  ;;  %v113_v49 = vld [vmem:[%s1775_s1 + $0x118] sm:$0xff] }
  0x33   :  { %672 = vmatpush2.msra.mxu1 %v69_v50  ;;  %448 = vmatprep.subr.mxu0 %v920_v0  ;;  %v221_v50 = vld [vmem:[%s1776_s2 + $0x78] sm:$0xff] }
  0x34   :  { %673 = vmatprep.subr.mxu1 %v920_v0  ;;  %449 = vmatpush2.msra.mxu0 %v36_v51  ;;  %v220_v51 = vld [vmem:[%s1776_s2 + $0x70] sm:$0xff] }
  0x35   :  { %674 = vmatpush2.msra.mxu1 %v68_v52  ;;  %450 = vmatprep.subr.mxu0 %v920_v0  ;;  %v110_v52 = vld [vmem:[%s1775_s1 + $0x100] sm:$0xff] }
  0x36   :  { %675 = vmatprep.subr.mxu1 %v920_v0  ;;  %451 = vmatpush2.msra.mxu0 %v35_v53  ;;  %v112_v53 = vld [vmem:[%s1775_s1 + $0x110] sm:$0xff] }
  0x37   :  { %676 = vmatpush2.msra.mxu1 %v67_v54  ;;  %452 = vmatprep.subr.mxu0 %v920_v0  ;;  %v115_v54 = vld [vmem:[%s1775_s1 + $0x128] sm:$0xff] }
  0x38   :  { %677 = vmatprep.subr.mxu1 %v920_v0  ;;  %453 = vmatpush2.msra.mxu0 %v34_v55  ;;  %v117_v55 = vld [vmem:[%s1775_s1 + $0x138] sm:$0xff] }
  0x39   :  { %678 = vmatpush2.msra.mxu1 %v66_v56  ;;  %454 = vmatprep.subr.mxu0 %v920_v0  ;;  %v223_v56 = vld [vmem:[%s1776_s2 + $0x88] sm:$0xff] }
  0x3a   :  { %679 = vmatprep.subr.mxu1 %v920_v0  ;;  %455 = vmatpush2.msra.mxu0 %v33_v57  ;;  %v222_v57 = vld [vmem:[%s1776_s2 + $0x80] sm:$0xff] }
  0x3b   :  { %680 = vmatpush2.msra.mxu1 %v65_v58  ;;  %456 = vmatprep.subr.mxu0 %v920_v0  ;;  %v114_v58 = vld [vmem:[%s1775_s1 + $0x120] sm:$0xff] }
  0x3c   :  { %681 = vmatprep.subr.mxu1 %v920_v0  ;;  %457 = vmatpush2.msra.mxu0 %v32_v59  ;;  %v116_v59 = vld [vmem:[%s1775_s1 + $0x130] sm:$0xff] }
  0x3d   :  { %682 = vmatpush2.msra.mxu1 %v64_v60  ;;  %458 = vmatprep.subr.mxu0 %v920_v0  ;;  %v119_v60 = vld [vmem:[%s1775_s1 + $0x148] sm:$0xff] }
  0x3e   :  { %683 = vmatprep.subr.mxu1 %v920_v0  ;;  %459 = vmatpush2.msra.mxu0 %v31_v61  ;;  %v121_v61 = vld [vmem:[%s1775_s1 + $0x158] sm:$0xff] }
  0x3f   :  { %684 = vmatpush2.msra.mxu1 %v63_v62  ;;  %460 = vmatprep.subr.mxu0 %v920_v0  ;;  %v225_v62 = vld [vmem:[%s1776_s2 + $0x98] sm:$0xff] }
  0x40   :  { %685 = vmatprep.subr.mxu1 %v920_v0  ;;  %461 = vmatpush2.msra.mxu0 %v30_v63  ;;  %v206_v0 = vld [vmem:[%s1776_s2] sm:$0xff]  ;;  %v224_v63 = vld [vmem:[%s1776_s2 + $0x90] sm:$0xff] }
  0x41   :  { %462 = vmatprep.mubr.f32.mxu0 %v79_v1  ;;  %686 = vmatpush2.msra.mxu1 %v62_v2  ;;  %v118_v1 = vld [vmem:[%s1775_s1 + $0x140] sm:$0xff]  ;;  %v120_v2 = vld [vmem:[%s1775_s1 + $0x150] sm:$0xff] }
  0x42   :  { %687 = vmatprep.mubr.f32.mxu1 %v81_v3  ;;  %463 = vmatmul.mubr.f32.vlgmr.msra.gmra.mxu0 %v78_v4  ;;  %v123_v3 = vld [vmem:[%s1775_s1 + $0x168] sm:$0xff]  ;;  %v125_v4 = vld [vmem:[%s1775_s1 + $0x178] sm:$0xff] }
  0x43   :  { %688 = vmatmul.mubr.f32.vlgmr.msra.gmra.mxu1 %v80_v5  ;;  %467 = vmatprep.mubr.f32.mxu0 %v83_v6  ;;  %v227_v5 = vld [vmem:[%s1776_s2 + $0xa8] sm:$0xff]  ;;  %v226_v6 = vld [vmem:[%s1776_s2 + $0xa0] sm:$0xff] }
  0x44   :  { %692 = vmatprep.mubr.f32.mxu1 %v85_v7  ;;  %918 = vset.pattern.permute.xlu0 %v921_v13  ;;  %v122_v7 = vld [vmem:[%s1775_s1 + $0x160] sm:$0xff] }
  0x45   :  { %919 = vset.pattern.permute.xlu1 %v921_v13  ;;  %240 = vperm.xlu0 %918, %v206_v0   ;;  %v124_v0 = vld [vmem:[%s1775_s1 + $0x170] sm:$0xff] }
  0x46   :  { %250 = vperm.xlu1 %919, %v208_v8   ;;  %468 = vmatmul.mubr.f32.gmra.mxu0 %v82_v9  ;;  %v127_v8 = vld [vmem:[%s1775_s1 + $0x188] sm:$0xff]  ;;  %v129_v9 = vld [vmem:[%s1775_s1 + $0x198] sm:$0xff]  ;;  %v128_v13 = vld [vmem:[%s1775_s1 + $0x190] sm:$0xff] }
  0x47   :  { %693 = vmatmul.mubr.f32.gmra.mxu1 %v84_v10  ;;  %472 = vmatprep.mubr.f32.mxu0 %v87_v11  ;;  %v229_v10 = vld [vmem:[%s1776_s2 + $0xb8] sm:$0xff]  ;;  %v228_v11 = vld [vmem:[%s1776_s2 + $0xb0] sm:$0xff] }
  0x48   :  { %697 = vmatprep.mubr.f32.mxu1 %v89_v12  ;;  %v126_v12 = vld [vmem:[%s1775_s1 + $0x180] sm:$0xff] }
  0x49   :  { %245 = vperm.xlu0 %918, %v207_v14   ;;  %v131_v14 = vld [vmem:[%s1775_s1 + $0x1a8] sm:$0xff] }
  0x4a   :  { %255 = vperm.xlu1 %919, %v209_v15   ;;  %473 = vmatmul.mubr.f32.gmra.mxu0 %v86_v16  ;;  %v133_v15 = vld [vmem:[%s1775_s1 + $0x1b8] sm:$0xff]  ;;  %v231_v16 = vld [vmem:[%s1776_s2 + $0xc8] sm:$0xff] }
  0x4b   :  { %698 = vmatmul.mubr.f32.gmra.mxu1 %v88_v17  ;;  %477 = vmatprep.mubr.f32.mxu0 %v91_v18  ;;  %v230_v17 = vld [vmem:[%s1776_s2 + $0xc0] sm:$0xff] }
  0x4c   :  { %702 = vmatprep.mubr.f32.mxu1 %v93_v19  ;;  %v130_v18 = vld [vmem:[%s1775_s1 + $0x1a0] sm:$0xff]  ;;  %v132_v19 = vld [vmem:[%s1775_s1 + $0x1b0] sm:$0xff] }
  0x4d   :  { %260 = vperm.xlu0 %918, %v210_v21   ;;  %v137_v21 = vld [vmem:[%s1775_s1 + $0x1d8] sm:$0xff] }
  0x4e   :  { %265 = vperm.xlu1 %919, %v211_v20   ;;  %478 = vmatmul.mubr.f32.gmra.mxu0 %v90_v22  ;;  %v135_v20 = vld [vmem:[%s1775_s1 + $0x1c8] sm:$0xff]  ;;  %v233_v22 = vld [vmem:[%s1776_s2 + $0xd8] sm:$0xff] }
  0x4f   :  { %703 = vmatmul.mubr.f32.gmra.mxu1 %v92_v23  ;;  %482 = vmatprep.mubr.f32.mxu0 %v95_v24  ;;  %v232_v23 = vld [vmem:[%s1776_s2 + $0xd0] sm:$0xff]  ;;  %v134_v24 = vld [vmem:[%s1775_s1 + $0x1c0] sm:$0xff] }
  0x50   :  { %707 = vmatprep.mubr.f32.mxu1 %v97_v25  ;;  %v136_v25 = vld [vmem:[%s1775_s1 + $0x1d0] sm:$0xff] }
  0x51   :  { %270 = vperm.xlu0 %918, %v212_v27   ;;  %v141_v27 = vld [vmem:[%s1775_s1 + $0x1f8] sm:$0xff] }
  0x52   :  { %275 = vperm.xlu1 %919, %v213_v26   ;;  %483 = vmatmul.mubr.f32.gmra.mxu0 %v94_v28  ;;  %v139_v26 = vld [vmem:[%s1775_s1 + $0x1e8] sm:$0xff] }
  0x53   :  { %708 = vmatmul.mubr.f32.gmra.mxu1 %v96_v29  ;;  %487 = vmatprep.mubr.f32.mxu0 %v99_v30  ;;  %v235_v28 = vld [vmem:[%s1776_s2 + $0xe8] sm:$0xff]  ;;  %v234_v29 = vld [vmem:[%s1776_s2 + $0xe0] sm:$0xff] }
  0x54   :  { %712 = vmatprep.mubr.f32.mxu1 %v101_v31  ;;  %v138_v30 = vld [vmem:[%s1775_s1 + $0x1e0] sm:$0xff]  ;;  %v140_v31 = vld [vmem:[%s1775_s1 + $0x1f0] sm:$0xff] }
  0x55   :  { %280 = vperm.xlu0 %918, %v214_v33   ;;  %v145_v33 = vld [vmem:[%s1775_s1 + $0x218] sm:$0xff] }
  0x56   :  { %285 = vperm.xlu1 %919, %v215_v32   ;;  %488 = vmatmul.mubr.f32.gmra.mxu0 %v98_v34  ;;  %v143_v32 = vld [vmem:[%s1775_s1 + $0x208] sm:$0xff]  ;;  %v237_v34 = vld [vmem:[%s1776_s2 + $0xf8] sm:$0xff] }
  0x57   :  { %713 = vmatmul.mubr.f32.gmra.mxu1 %v100_v35  ;;  %492 = vmatprep.mubr.f32.mxu0 %v103_v36  ;;  %v236_v35 = vld [vmem:[%s1776_s2 + $0xf0] sm:$0xff]  ;;  %v142_v36 = vld [vmem:[%s1775_s1 + $0x200] sm:$0xff] }
  0x58   :  { %717 = vmatprep.mubr.f32.mxu1 %v105_v37  ;;  %v144_v37 = vld [vmem:[%s1775_s1 + $0x210] sm:$0xff] }
  0x59   :  { %290 = vperm.xlu0 %918, %v216_v39   ;;  %v149_v39 = vld [vmem:[%s1775_s1 + $0x238] sm:$0xff] }
  0x5a   :  { %295 = vperm.xlu1 %919, %v217_v38   ;;  %493 = vmatmul.mubr.f32.gmra.mxu0 %v102_v40  ;;  %v147_v38 = vld [vmem:[%s1775_s1 + $0x228] sm:$0xff]  ;;  %v146_v40 = vld [vmem:[%s1775_s1 + $0x220] sm:$0xff] }
  0x5b   :  { %718 = vmatmul.mubr.f32.gmra.mxu1 %v104_v41  ;;  %497 = vmatprep.mubr.f32.mxu0 %v107_v42  ;;  %v148_v41 = vld [vmem:[%s1775_s1 + $0x230] sm:$0xff]  ;;  %v151_v42 = vld [vmem:[%s1775_s1 + $0x248] sm:$0xff] }
  0x5c   :  { %722 = vmatprep.mubr.f32.mxu1 %v109_v43  ;;  %v153_v43 = vld [vmem:[%s1775_s1 + $0x258] sm:$0xff] }
  0x5d   :  { %300 = vperm.xlu0 %918, %v218_v45   ;;  %v152_v45 = vld [vmem:[%s1775_s1 + $0x250] sm:$0xff] }
  0x5e   :  { %305 = vperm.xlu1 %919, %v219_v44   ;;  %498 = vmatmul.mubr.f32.gmra.mxu0 %v106_v46  ;;  %v150_v44 = vld [vmem:[%s1775_s1 + $0x240] sm:$0xff]  ;;  %v155_v46 = vld [vmem:[%s1775_s1 + $0x268] sm:$0xff] }
  0x5f   :  { %723 = vmatmul.mubr.f32.gmra.mxu1 %v108_v47  ;;  %502 = vmatprep.mubr.f32.mxu0 %v111_v48  ;;  %v157_v47 = vld [vmem:[%s1775_s1 + $0x278] sm:$0xff]  ;;  %v154_v48 = vld [vmem:[%s1775_s1 + $0x260] sm:$0xff] }
  0x60   :  { %727 = vmatprep.mubr.f32.mxu1 %v113_v49  ;;  %v156_v49 = vld [vmem:[%s1775_s1 + $0x270] sm:$0xff] }
  0x61   :  { %310 = vperm.xlu0 %918, %v220_v51   ;;  %v161_v51 = vld [vmem:[%s1775_s1 + $0x298] sm:$0xff] }
  0x62   :  { %315 = vperm.xlu1 %919, %v221_v50   ;;  %503 = vmatmul.mubr.f32.gmra.mxu0 %v110_v52  ;;  %v159_v50 = vld [vmem:[%s1775_s1 + $0x288] sm:$0xff]  ;;  %v158_v52 = vld [vmem:[%s1775_s1 + $0x280] sm:$0xff] }
  0x63   :  { %728 = vmatmul.mubr.f32.gmra.mxu1 %v112_v53  ;;  %507 = vmatprep.mubr.f32.mxu0 %v115_v54  ;;  %v160_v53 = vld [vmem:[%s1775_s1 + $0x290] sm:$0xff]  ;;  %v163_v54 = vld [vmem:[%s1775_s1 + $0x2a8] sm:$0xff] }
  0x64   :  { %732 = vmatprep.mubr.f32.mxu1 %v117_v55  ;;  %v165_v55 = vld [vmem:[%s1775_s1 + $0x2b8] sm:$0xff] }
  0x65   :  { %320 = vperm.xlu0 %918, %v222_v57   ;;  %v164_v57 = vld [vmem:[%s1775_s1 + $0x2b0] sm:$0xff] }
  0x66   :  { %325 = vperm.xlu1 %919, %v223_v56   ;;  %508 = vmatmul.mubr.f32.gmra.mxu0 %v114_v58  ;;  %v162_v56 = vld [vmem:[%s1775_s1 + $0x2a0] sm:$0xff]  ;;  %v167_v58 = vld [vmem:[%s1775_s1 + $0x2c8] sm:$0xff] }
  0x67   :  { %733 = vmatmul.mubr.f32.gmra.mxu1 %v116_v59  ;;  %512 = vmatprep.mubr.f32.mxu0 %v119_v60  ;;  %v169_v59 = vld [vmem:[%s1775_s1 + $0x2d8] sm:$0xff]  ;;  %v166_v60 = vld [vmem:[%s1775_s1 + $0x2c0] sm:$0xff] }
  0x68   :  { %737 = vmatprep.mubr.f32.mxu1 %v121_v61  ;;  %v168_v61 = vld [vmem:[%s1775_s1 + $0x2d0] sm:$0xff] }
  0x69   :  { %330 = vperm.xlu0 %918, %v224_v63   ;;  %v173_v63 = vld [vmem:[%s1775_s1 + $0x2f8] sm:$0xff] }
  0x6a   :  { %335 = vperm.xlu1 %919, %v225_v62   ;;  %513 = vmatmul.mubr.f32.gmra.mxu0 %v118_v1  ;;  %v171_v62 = vld [vmem:[%s1775_s1 + $0x2e8] sm:$0xff]  ;;  %v170_v1 = vld [vmem:[%s1775_s1 + $0x2e0] sm:$0xff] }
  0x6b   :  { %738 = vmatmul.mubr.f32.gmra.mxu1 %v120_v2  ;;  %517 = vmatprep.mubr.f32.mxu0 %v123_v3  ;;  %v172_v2 = vld [vmem:[%s1775_s1 + $0x2f0] sm:$0xff]  ;;  %v175_v3 = vld [vmem:[%s1775_s1 + $0x308] sm:$0xff] }
  0x6c   :  { %742 = vmatprep.mubr.f32.mxu1 %v125_v4  ;;  %v177_v4 = vld [vmem:[%s1775_s1 + $0x318] sm:$0xff] }
  0x6d   :  { %340 = vperm.xlu0 %918, %v226_v6   ;;  %v176_v6 = vld [vmem:[%s1775_s1 + $0x310] sm:$0xff] }
  0x6e   :  { %345 = vperm.xlu1 %919, %v227_v5   ;;  %518 = vmatmul.mubr.f32.gmra.mxu0 %v122_v7  ;;  %v174_v5 = vld [vmem:[%s1775_s1 + $0x300] sm:$0xff]  ;;  %v179_v7 = vld [vmem:[%s1775_s1 + $0x328] sm:$0xff] }
  0x6f   :  { %743 = vmatmul.mubr.f32.gmra.mxu1 %v124_v0  ;;  %522 = vmatprep.mubr.f32.mxu0 %v127_v8  ;;  %v181_v0 = vld [vmem:[%s1775_s1 + $0x338] sm:$0xff]  ;;  %v178_v8 = vld [vmem:[%s1775_s1 + $0x320] sm:$0xff] }
  0x70   :  { %747 = vmatprep.mubr.f32.mxu1 %v129_v9  ;;  %v180_v9 = vld [vmem:[%s1775_s1 + $0x330] sm:$0xff] }
  0x71   :  { %350 = vperm.xlu0 %918, %v228_v11   ;;  %v185_v11 = vld [vmem:[%s1775_s1 + $0x358] sm:$0xff] }
  0x72   :  { %355 = vperm.xlu1 %919, %v229_v10   ;;  %523 = vmatmul.mubr.f32.gmra.mxu0 %v126_v12  ;;  %v183_v10 = vld [vmem:[%s1775_s1 + $0x348] sm:$0xff]  ;;  %v182_v12 = vld [vmem:[%s1775_s1 + $0x340] sm:$0xff] }
  0x73   :  { %748 = vmatmul.mubr.f32.gmra.mxu1 %v128_v13  ;;  %527 = vmatprep.mubr.f32.mxu0 %v131_v14  ;;  %v184_v13 = vld [vmem:[%s1775_s1 + $0x350] sm:$0xff]  ;;  %v187_v14 = vld [vmem:[%s1775_s1 + $0x368] sm:$0xff] }
  0x74   :  { %752 = vmatprep.mubr.f32.mxu1 %v133_v15  ;;  %v189_v15 = vld [vmem:[%s1775_s1 + $0x378] sm:$0xff] }
  0x75   :  { %360 = vperm.xlu0 %918, %v230_v17   ;;  %v188_v17 = vld [vmem:[%s1775_s1 + $0x370] sm:$0xff] }
  0x76   :  { %365 = vperm.xlu1 %919, %v231_v16   ;;  %528 = vmatmul.mubr.f32.gmra.mxu0 %v130_v18  ;;  %v186_v16 = vld [vmem:[%s1775_s1 + $0x360] sm:$0xff]  ;;  %v191_v18 = vld [vmem:[%s1775_s1 + $0x388] sm:$0xff] }
  0x77   :  { %753 = vmatmul.mubr.f32.gmra.mxu1 %v132_v19  ;;  %532 = vmatprep.mubr.f32.mxu0 %v135_v20  ;;  %v193_v19 = vld [vmem:[%s1775_s1 + $0x398] sm:$0xff]  ;;  %v190_v20 = vld [vmem:[%s1775_s1 + $0x380] sm:$0xff] }
  0x78   :  { %757 = vmatprep.mubr.f32.mxu1 %v137_v21  ;;  %v192_v21 = vld [vmem:[%s1775_s1 + $0x390] sm:$0xff] }
  0x79   :  { %370 = vperm.xlu0 %918, %v232_v23   ;;  %v197_v23 = vld [vmem:[%s1775_s1 + $0x3b8] sm:$0xff] }
  0x7a   :  { %375 = vperm.xlu1 %919, %v233_v22   ;;  %533 = vmatmul.mubr.f32.gmra.mxu0 %v134_v24  ;;  %v195_v22 = vld [vmem:[%s1775_s1 + $0x3a8] sm:$0xff]  ;;  %v194_v24 = vld [vmem:[%s1775_s1 + $0x3a0] sm:$0xff] }
  0x7b   :  { %758 = vmatmul.mubr.f32.gmra.mxu1 %v136_v25  ;;  %537 = vmatprep.mubr.f32.mxu0 %v139_v26  ;;  %v196_v25 = vld [vmem:[%s1775_s1 + $0x3b0] sm:$0xff]  ;;  %v199_v26 = vld [vmem:[%s1775_s1 + $0x3c8] sm:$0xff] }
  0x7c   :  { %762 = vmatprep.mubr.f32.mxu1 %v141_v27  ;;  %v201_v27 = vld [vmem:[%s1775_s1 + $0x3d8] sm:$0xff] }
  0x7d   :  { %380 = vperm.xlu0 %918, %v234_v29   ;;  %v200_v29 = vld [vmem:[%s1775_s1 + $0x3d0] sm:$0xff] }
  0x7e   :  { %385 = vperm.xlu1 %919, %v235_v28   ;;  %538 = vmatmul.mubr.f32.gmra.mxu0 %v138_v30  ;;  %v198_v28 = vld [vmem:[%s1775_s1 + $0x3c0] sm:$0xff]  ;;  %v203_v30 = vld [vmem:[%s1775_s1 + $0x3e8] sm:$0xff] }
  0x7f   :  { %763 = vmatmul.mubr.f32.gmra.mxu1 %v140_v31  ;;  %542 = vmatprep.mubr.f32.mxu0 %v143_v32  ;;  %v205_v31 = vld [vmem:[%s1775_s1 + $0x3f8] sm:$0xff]  ;;  %v202_v32 = vld [vmem:[%s1775_s1 + $0x3e0] sm:$0xff] }
  0x80   :  { %767 = vmatprep.mubr.f32.mxu1 %v145_v33  ;;  %v204_v33 = vld [vmem:[%s1775_s1 + $0x3f0] sm:$0xff] }
  0x81   :  { %390 = vperm.xlu0 %918, %v236_v35  }
  0x82   :  { %395 = vperm.xlu1 %919, %v237_v34   ;;  %543 = vmatmul.mubr.f32.gmra.mxu0 %v142_v36 }
  0x83   :  { %768 = vmatmul.mubr.f32.gmra.mxu1 %v144_v37  ;;  %547 = vmatprep.mubr.f32.mxu0 %v147_v38 }
  0x84   :  { %772 = vmatprep.mubr.f32.mxu1 %v149_v39 }
  0x86   :  { %548 = vmatmul.mubr.f32.gmra.mxu0 %v146_v40 }
  0x87   :  { %773 = vmatmul.mubr.f32.gmra.mxu1 %v148_v41  ;;  %552 = vmatprep.mubr.f32.mxu0 %v151_v42 }
  0x88   :  { %777 = vmatprep.mubr.f32.mxu1 %v153_v43 }
  0x8a   :  { %553 = vmatmul.mubr.f32.gmra.mxu0 %v150_v44 }
  0x8b   :  { %778 = vmatmul.mubr.f32.gmra.mxu1 %v152_v45  ;;  %557 = vmatprep.mubr.f32.mxu0 %v155_v46 }
  0x8c   :  { %782 = vmatprep.mubr.f32.mxu1 %v157_v47 }
  0x8e   :  { %558 = vmatmul.mubr.f32.gmra.mxu0 %v154_v48 }
  0x8f   :  { %783 = vmatmul.mubr.f32.gmra.mxu1 %v156_v49  ;;  %562 = vmatprep.mubr.f32.mxu0 %v159_v50 }
  0x90   :  { %787 = vmatprep.mubr.f32.mxu1 %v161_v51 }
  0x92   :  { %563 = vmatmul.mubr.f32.gmra.mxu0 %v158_v52 }
  0x93   :  { %788 = vmatmul.mubr.f32.gmra.mxu1 %v160_v53  ;;  %567 = vmatprep.mubr.f32.mxu0 %v163_v54 }
  0x94   :  { %792 = vmatprep.mubr.f32.mxu1 %v165_v55 }
  0x96   :  { %568 = vmatmul.mubr.f32.gmra.mxu0 %v162_v56 }
  0x97   :  { %793 = vmatmul.mubr.f32.gmra.mxu1 %v164_v57  ;;  %572 = vmatprep.mubr.f32.mxu0 %v167_v58 }
  0x98   :  { %797 = vmatprep.mubr.f32.mxu1 %v169_v59 }
  0x9a   :  { %573 = vmatmul.mubr.f32.gmra.mxu0 %v166_v60 }
  0x9b   :  { %798 = vmatmul.mubr.f32.gmra.mxu1 %v168_v61  ;;  %577 = vmatprep.mubr.f32.mxu0 %v171_v62 }
  0x9c   :  { %802 = vmatprep.mubr.f32.mxu1 %v173_v63 }
  0x9e   :  { %578 = vmatmul.mubr.f32.gmra.mxu0 %v170_v1 }
  0x9f   :  { %803 = vmatmul.mubr.f32.gmra.mxu1 %v172_v2  ;;  %582 = vmatprep.mubr.f32.mxu0 %v175_v3 }
  0xa0   :  { %807 = vmatprep.mubr.f32.mxu1 %v177_v4 }
  0xa2   :  { %583 = vmatmul.mubr.f32.gmra.mxu0 %v174_v5 }
  0xa3   :  { %808 = vmatmul.mubr.f32.gmra.mxu1 %v176_v6  ;;  %587 = vmatprep.mubr.f32.mxu0 %v179_v7 }
  0xa4   :  { %812 = vmatprep.mubr.f32.mxu1 %v181_v0 }
  0xa6   :  { %588 = vmatmul.mubr.f32.gmra.mxu0 %v178_v8 }
  0xa7   :  { %813 = vmatmul.mubr.f32.gmra.mxu1 %v180_v9  ;;  %592 = vmatprep.mubr.f32.mxu0 %v183_v10 }
  0xa8   :  { %817 = vmatprep.mubr.f32.mxu1 %v185_v11 }
  0xaa   :  { %593 = vmatmul.mubr.f32.gmra.mxu0 %v182_v12 }
  0xab   :  { %818 = vmatmul.mubr.f32.gmra.mxu1 %v184_v13  ;;  %597 = vmatprep.mubr.f32.mxu0 %v187_v14 }
  0xac   :  { %822 = vmatprep.mubr.f32.mxu1 %v189_v15 }
  0xae   :  { %598 = vmatmul.mubr.f32.gmra.mxu0 %v186_v16 }
  0xaf   :  { %823 = vmatmul.mubr.f32.gmra.mxu1 %v188_v17  ;;  %602 = vmatprep.mubr.f32.mxu0 %v191_v18 }
  0xb0   :  { %827 = vmatprep.mubr.f32.mxu1 %v193_v19 }
  0xb2   :  { %603 = vmatmul.mubr.f32.gmra.mxu0 %v190_v20 }
  0xb3   :  { %828 = vmatmul.mubr.f32.gmra.mxu1 %v192_v21  ;;  %607 = vmatprep.mubr.f32.mxu0 %v195_v22 }
  0xb4   :  { %832 = vmatprep.mubr.f32.mxu1 %v197_v23 }
  0xb6   :  { %608 = vmatmul.mubr.f32.gmra.mxu0 %v194_v24 }
  0xb7   :  { %833 = vmatmul.mubr.f32.gmra.mxu1 %v196_v25  ;;  %612 = vmatprep.mubr.f32.mxu0 %v199_v26 }
  0xb8   :  { %837 = vmatprep.mubr.f32.mxu1 %v201_v27 }
  0xba   :  { %613 = vmatmul.mubr.f32.gmra.mxu0 %v198_v28 }
  0xbb   :  { %838 = vmatmul.mubr.f32.gmra.mxu1 %v200_v29  ;;  %617 = vmatprep.mubr.f32.mxu0 %v203_v30 }
  0xbc   :  { %842 = vmatprep.mubr.f32.mxu1 %v205_v31 }
  0xbe   :  { %618 = vmatmul.mubr.f32.gmra.mxu0 %v202_v32 }
  0xbf   :  { %843 = vmatmul.mubr.f32.gmra.mxu1 %v204_v33 }
  0xc0   :  { %v241_v34 = vpop.permute.xlu0 %240 }
  0xc1   :  { %v251_v45 = vpop.permute.xlu1 %250 }
  0xc4   :  { %v246_v38 = vpop.permute.xlu0 %245 }
  0xc5   :  { %v256_v56 = vpop.permute.xlu1 %255 }
  0xc8   :  { %v261_v1 = vpop.permute.xlu0 %260 }
  0xc9   :  { %v266_v8 = vpop.permute.xlu1 %265 }
  0xcc   :  { %v271_v16 = vpop.permute.xlu0 %270 }
  0xcd   :  { %v276_v24 = vpop.permute.xlu1 %275 }
  0xd0   :  { %v281_v32 = vpop.permute.xlu0 %280 }
 0x102   :  { %v464_v35 = vpop.f32.mrf.mxu0 }
 0x103   :  { %v689_v36 = vpop.f32.mrf.mxu1  ;;  %v465_v37 = vadd.f32 %v464_v35, %v241_v34 }
 0x104   :  { %v466_v39 = vpop.f32.mrf.mxu0 }
 0x105   :  { %v691_v40 = vpop.f32.mrf.mxu1  ;;  %v690_v41 = vadd.f32 %v689_v36, %v465_v37 }
 0x106   :  { %v469_v42 = vpop.f32.mrf.mxu0  ;;  %v286_v40 = vpop.permute.xlu1 %285 }
 0x107   :  { %v694_v43 = vpop.f32.mrf.mxu1  ;;  %v848_v44 = vmax.f32 %v690_v41, 0.0  ;;  %v470_v46 = vadd.f32 %v469_v42, %v246_v38 }
 0x108   :  { %v471_v47 = vpop.f32.mrf.mxu0 }
 0x109   :  { %v696_v48 = vpop.f32.mrf.mxu1  ;;  %880 = vst [vmem:[%s1777_s3] sm:$0xff] %v848_v44  ;;  %v695_v49 = vadd.f32 %v694_v43, %v470_v46 }
 0x10a   :  { %v474_v50 = vpop.f32.mrf.mxu0  ;;  %v291_v48 = vpop.permute.xlu0 %290 }
 0x10b   :  { %v699_v51 = vpop.f32.mrf.mxu1  ;;  %v849_v52 = vmax.f32 %v695_v49, 0.0  ;;  %v475_v53 = vadd.f32 %v474_v50, %v251_v45 }
 0x10c   :  { %v476_v54 = vpop.f32.mrf.mxu0 }
 0x10d   :  { %v701_v55 = vpop.f32.mrf.mxu1  ;;  %881 = vst [vmem:[%s1777_s3 + $0x8] sm:$0xff] %v849_v52  ;;  %v700_v57 = vadd.f32 %v699_v51, %v475_v53 }
 0x10e   :  { %v479_v58 = vpop.f32.mrf.mxu0 }
 0x10f   :  { %v704_v59 = vpop.f32.mrf.mxu1  ;;  %v850_v60 = vmax.f32 %v700_v57, 0.0  ;;  %v480_v61 = vadd.f32 %v479_v58, %v256_v56  ;;  %v296_v56 = vpop.permute.xlu1 %295 }
 0x110   :  { %v481_v62 = vpop.f32.mrf.mxu0 }
 0x111   :  { %v706_v63 = vpop.f32.mrf.mxu1  ;;  %882 = vst [vmem:[%s1777_s3 + $0x10] sm:$0xff] %v850_v60  ;;  %v705_v2 = vadd.f32 %v704_v59, %v480_v61 }
 0x112   :  { %v484_v3 = vpop.f32.mrf.mxu0 }
 0x113   :  { %v709_v4 = vpop.f32.mrf.mxu1  ;;  %v851_v5 = vmax.f32 %v705_v2, 0.0  ;;  %v485_v6 = vadd.f32 %v484_v3, %v261_v1  ;;  %v301_v1 = vpop.permute.xlu0 %300 }
 0x114   :  { %v486_v7 = vpop.f32.mrf.mxu0 }
 0x115   :  { %v711_v0 = vpop.f32.mrf.mxu1  ;;  %883 = vst [vmem:[%s1777_s3 + $0x18] sm:$0xff] %v851_v5  ;;  %v710_v9 = vadd.f32 %v709_v4, %v485_v6 }
 0x116   :  { %v489_v10 = vpop.f32.mrf.mxu0 }
 0x117   :  { %v714_v11 = vpop.f32.mrf.mxu1  ;;  %v852_v12 = vmax.f32 %v710_v9, 0.0  ;;  %v490_v13 = vadd.f32 %v489_v10, %v266_v8  ;;  %v306_v8 = vpop.permute.xlu1 %305 }
 0x118   :  { %v491_v14 = vpop.f32.mrf.mxu0 }
 0x119   :  { %v716_v15 = vpop.f32.mrf.mxu1  ;;  %884 = vst [vmem:[%s1777_s3 + $0x20] sm:$0xff] %v852_v12  ;;  %v715_v17 = vadd.f32 %v714_v11, %v490_v13 }
 0x11a   :  { %v494_v18 = vpop.f32.mrf.mxu0 }
 0x11b   :  { %v719_v19 = vpop.f32.mrf.mxu1  ;;  %v853_v20 = vmax.f32 %v715_v17, 0.0  ;;  %v495_v21 = vadd.f32 %v494_v18, %v271_v16  ;;  %v311_v16 = vpop.permute.xlu0 %310 }
 0x11c   :  { %v496_v22 = vpop.f32.mrf.mxu0 }
 0x11d   :  { %v721_v23 = vpop.f32.mrf.mxu1  ;;  %885 = vst [vmem:[%s1777_s3 + $0x28] sm:$0xff] %v853_v20  ;;  %v720_v25 = vadd.f32 %v719_v19, %v495_v21 }
 0x11e   :  { %v499_v26 = vpop.f32.mrf.mxu0 }
 0x11f   :  { %v724_v27 = vpop.f32.mrf.mxu1  ;;  %v854_v28 = vmax.f32 %v720_v25, 0.0  ;;  %v500_v29 = vadd.f32 %v499_v26, %v276_v24  ;;  %v316_v24 = vpop.permute.xlu1 %315 }
 0x120   :  { %v501_v30 = vpop.f32.mrf.mxu0 }
 0x121   :  { %v726_v31 = vpop.f32.mrf.mxu1  ;;  %886 = vst [vmem:[%s1777_s3 + $0x30] sm:$0xff] %v854_v28  ;;  %v725_v33 = vadd.f32 %v724_v27, %v500_v29 }
 0x122   :  { %v504_v34 = vpop.f32.mrf.mxu0 }
 0x123   :  { %v729_v35 = vpop.f32.mrf.mxu1  ;;  %v855_v36 = vmax.f32 %v725_v33, 0.0  ;;  %v505_v37 = vadd.f32 %v504_v34, %v281_v32  ;;  %v321_v32 = vpop.permute.xlu0 %320 }
 0x124   :  { %v506_v38 = vpop.f32.mrf.mxu0 }
 0x125   :  { %v731_v39 = vpop.f32.mrf.mxu1  ;;  %887 = vst [vmem:[%s1777_s3 + $0x38] sm:$0xff] %v855_v36  ;;  %v730_v41 = vadd.f32 %v729_v35, %v505_v37 }
 0x126   :  { %v509_v42 = vpop.f32.mrf.mxu0 }
 0x127   :  { %v734_v43 = vpop.f32.mrf.mxu1  ;;  %v856_v44 = vmax.f32 %v730_v41, 0.0  ;;  %v510_v45 = vadd.f32 %v509_v42, %v286_v40  ;;  %v326_v40 = vpop.permute.xlu1 %325 }
 0x128   :  { %v511_v46 = vpop.f32.mrf.mxu0 }
 0x129   :  { %v736_v47 = vpop.f32.mrf.mxu1  ;;  %888 = vst [vmem:[%s1777_s3 + $0x40] sm:$0xff] %v856_v44  ;;  %v735_v49 = vadd.f32 %v734_v43, %v510_v45 }
 0x12a   :  { %v514_v50 = vpop.f32.mrf.mxu0 }
 0x12b   :  { %v739_v51 = vpop.f32.mrf.mxu1  ;;  %v857_v52 = vmax.f32 %v735_v49, 0.0  ;;  %v515_v53 = vadd.f32 %v514_v50, %v291_v48  ;;  %v331_v48 = vpop.permute.xlu0 %330 }
 0x12c   :  { %v516_v54 = vpop.f32.mrf.mxu0 }
 0x12d   :  { %v741_v55 = vpop.f32.mrf.mxu1  ;;  %889 = vst [vmem:[%s1777_s3 + $0x48] sm:$0xff] %v857_v52  ;;  %v740_v57 = vadd.f32 %v739_v51, %v515_v53 }
 0x12e   :  { %v519_v58 = vpop.f32.mrf.mxu0 }
 0x12f   :  { %v744_v59 = vpop.f32.mrf.mxu1  ;;  %v858_v60 = vmax.f32 %v740_v57, 0.0  ;;  %v520_v61 = vadd.f32 %v519_v58, %v296_v56  ;;  %v336_v56 = vpop.permute.xlu1 %335 }
 0x130   :  { %v521_v62 = vpop.f32.mrf.mxu0 }
 0x131   :  { %v746_v63 = vpop.f32.mrf.mxu1  ;;  %890 = vst [vmem:[%s1777_s3 + $0x50] sm:$0xff] %v858_v60  ;;  %v745_v2 = vadd.f32 %v744_v59, %v520_v61 }
 0x132   :  { %v524_v3 = vpop.f32.mrf.mxu0 }
 0x133   :  { %v749_v4 = vpop.f32.mrf.mxu1  ;;  %v859_v5 = vmax.f32 %v745_v2, 0.0  ;;  %v525_v6 = vadd.f32 %v524_v3, %v301_v1  ;;  %v341_v1 = vpop.permute.xlu0 %340 }
 0x134   :  { %v526_v7 = vpop.f32.mrf.mxu0 }
 0x135   :  { %v751_v0 = vpop.f32.mrf.mxu1  ;;  %891 = vst [vmem:[%s1777_s3 + $0x58] sm:$0xff] %v859_v5  ;;  %v750_v9 = vadd.f32 %v749_v4, %v525_v6 }
 0x136   :  { %v529_v10 = vpop.f32.mrf.mxu0 }
 0x137   :  { %v754_v11 = vpop.f32.mrf.mxu1  ;;  %v860_v12 = vmax.f32 %v750_v9, 0.0  ;;  %v530_v13 = vadd.f32 %v529_v10, %v306_v8  ;;  %v346_v8 = vpop.permute.xlu1 %345 }
 0x138   :  { %v531_v14 = vpop.f32.mrf.mxu0 }
 0x139   :  { %v756_v15 = vpop.f32.mrf.mxu1  ;;  %892 = vst [vmem:[%s1777_s3 + $0x60] sm:$0xff] %v860_v12  ;;  %v755_v17 = vadd.f32 %v754_v11, %v530_v13 }
 0x13a   :  { %v534_v18 = vpop.f32.mrf.mxu0 }
 0x13b   :  { %v759_v19 = vpop.f32.mrf.mxu1  ;;  %v861_v20 = vmax.f32 %v755_v17, 0.0  ;;  %v535_v21 = vadd.f32 %v534_v18, %v311_v16  ;;  %v351_v16 = vpop.permute.xlu0 %350 }
 0x13c   :  { %v536_v22 = vpop.f32.mrf.mxu0 }
 0x13d   :  { %v761_v23 = vpop.f32.mrf.mxu1  ;;  %893 = vst [vmem:[%s1777_s3 + $0x68] sm:$0xff] %v861_v20  ;;  %v760_v25 = vadd.f32 %v759_v19, %v535_v21 }
 0x13e   :  { %v539_v26 = vpop.f32.mrf.mxu0 }
 0x13f   :  { %v764_v27 = vpop.f32.mrf.mxu1  ;;  %v862_v28 = vmax.f32 %v760_v25, 0.0  ;;  %v540_v29 = vadd.f32 %v539_v26, %v316_v24  ;;  %v356_v24 = vpop.permute.xlu1 %355 }
 0x140   :  { %v541_v30 = vpop.f32.mrf.mxu0 }
 0x141   :  { %v766_v31 = vpop.f32.mrf.mxu1  ;;  %894 = vst [vmem:[%s1777_s3 + $0x70] sm:$0xff] %v862_v28  ;;  %v765_v33 = vadd.f32 %v764_v27, %v540_v29 }
 0x142   :  { %v544_v34 = vpop.f32.mrf.mxu0 }
 0x143   :  { %v769_v35 = vpop.f32.mrf.mxu1  ;;  %v863_v36 = vmax.f32 %v765_v33, 0.0  ;;  %v545_v37 = vadd.f32 %v544_v34, %v321_v32  ;;  %v361_v32 = vpop.permute.xlu0 %360 }
 0x144   :  { %v546_v38 = vpop.f32.mrf.mxu0 }
 0x145   :  { %v771_v39 = vpop.f32.mrf.mxu1  ;;  %895 = vst [vmem:[%s1777_s3 + $0x78] sm:$0xff] %v863_v36  ;;  %v770_v41 = vadd.f32 %v769_v35, %v545_v37 }
 0x146   :  { %v549_v42 = vpop.f32.mrf.mxu0 }
 0x147   :  { %v774_v43 = vpop.f32.mrf.mxu1  ;;  %v864_v44 = vmax.f32 %v770_v41, 0.0  ;;  %v550_v45 = vadd.f32 %v549_v42, %v326_v40  ;;  %v366_v40 = vpop.permute.xlu1 %365 }
 0x148   :  { %v551_v46 = vpop.f32.mrf.mxu0 }
 0x149   :  { %v776_v47 = vpop.f32.mrf.mxu1  ;;  %896 = vst [vmem:[%s1777_s3 + $0x80] sm:$0xff] %v864_v44  ;;  %v775_v49 = vadd.f32 %v774_v43, %v550_v45 }
 0x14a   :  { %v554_v50 = vpop.f32.mrf.mxu0 }
 0x14b   :  { %v779_v51 = vpop.f32.mrf.mxu1  ;;  %v865_v52 = vmax.f32 %v775_v49, 0.0  ;;  %v555_v53 = vadd.f32 %v554_v50, %v331_v48  ;;  %v371_v48 = vpop.permute.xlu0 %370 }
 0x14c   :  { %v556_v54 = vpop.f32.mrf.mxu0 }
 0x14d   :  { %v781_v55 = vpop.f32.mrf.mxu1  ;;  %897 = vst [vmem:[%s1777_s3 + $0x88] sm:$0xff] %v865_v52  ;;  %v780_v57 = vadd.f32 %v779_v51, %v555_v53 }
 0x14e   :  { %v559_v58 = vpop.f32.mrf.mxu0 }
 0x14f   :  { %v784_v59 = vpop.f32.mrf.mxu1  ;;  %v866_v60 = vmax.f32 %v780_v57, 0.0  ;;  %v560_v61 = vadd.f32 %v559_v58, %v336_v56  ;;  %v376_v56 = vpop.permute.xlu1 %375 }
 0x150   :  { %v561_v62 = vpop.f32.mrf.mxu0 }
 0x151   :  { %v786_v63 = vpop.f32.mrf.mxu1  ;;  %898 = vst [vmem:[%s1777_s3 + $0x90] sm:$0xff] %v866_v60  ;;  %v785_v2 = vadd.f32 %v784_v59, %v560_v61 }
 0x152   :  { %v564_v3 = vpop.f32.mrf.mxu0 }
 0x153   :  { %v789_v4 = vpop.f32.mrf.mxu1  ;;  %v867_v5 = vmax.f32 %v785_v2, 0.0  ;;  %v565_v6 = vadd.f32 %v564_v3, %v341_v1  ;;  %v381_v1 = vpop.permute.xlu0 %380 }
 0x154   :  { %v566_v7 = vpop.f32.mrf.mxu0 }
 0x155   :  { %v791_v0 = vpop.f32.mrf.mxu1  ;;  %899 = vst [vmem:[%s1777_s3 + $0x98] sm:$0xff] %v867_v5  ;;  %v790_v9 = vadd.f32 %v789_v4, %v565_v6 }
 0x156   :  { %v569_v10 = vpop.f32.mrf.mxu0 }
 0x157   :  { %v794_v11 = vpop.f32.mrf.mxu1  ;;  %v868_v12 = vmax.f32 %v790_v9, 0.0  ;;  %v570_v13 = vadd.f32 %v569_v10, %v346_v8  ;;  %v386_v8 = vpop.permute.xlu1 %385 }
 0x158   :  { %v571_v14 = vpop.f32.mrf.mxu0 }
 0x159   :  { %v796_v15 = vpop.f32.mrf.mxu1  ;;  %900 = vst [vmem:[%s1777_s3 + $0xa0] sm:$0xff] %v868_v12  ;;  %v795_v17 = vadd.f32 %v794_v11, %v570_v13 }
 0x15a   :  { %v574_v18 = vpop.f32.mrf.mxu0 }
 0x15b   :  { %v799_v19 = vpop.f32.mrf.mxu1  ;;  %v869_v20 = vmax.f32 %v795_v17, 0.0  ;;  %v575_v21 = vadd.f32 %v574_v18, %v351_v16  ;;  %v391_v16 = vpop.permute.xlu0 %390 }
 0x15c   :  { %v576_v22 = vpop.f32.mrf.mxu0 }
 0x15d   :  { %v801_v23 = vpop.f32.mrf.mxu1  ;;  %901 = vst [vmem:[%s1777_s3 + $0xa8] sm:$0xff] %v869_v20  ;;  %v800_v25 = vadd.f32 %v799_v19, %v575_v21 }
 0x15e   :  { %v579_v26 = vpop.f32.mrf.mxu0 }
 0x15f   :  { %v804_v27 = vpop.f32.mrf.mxu1  ;;  %v870_v28 = vmax.f32 %v800_v25, 0.0  ;;  %v580_v29 = vadd.f32 %v579_v26, %v356_v24  ;;  %v396_v24 = vpop.permute.xlu1 %395 }
 0x160   :  { %v581_v30 = vpop.f32.mrf.mxu0 }
 0x161   :  { %v806_v31 = vpop.f32.mrf.mxu1  ;;  %902 = vst [vmem:[%s1777_s3 + $0xb0] sm:$0xff] %v870_v28  ;;  %v805_v33 = vadd.f32 %v804_v27, %v580_v29 }
 0x162   :  { %v584_v34 = vpop.f32.mrf.mxu0 }
 0x163   :  { %v809_v35 = vpop.f32.mrf.mxu1  ;;  %v871_v36 = vmax.f32 %v805_v33, 0.0  ;;  %v585_v37 = vadd.f32 %v584_v34, %v361_v32 }
 0x164   :  { %v586_v38 = vpop.f32.mrf.mxu0 }
 0x165   :  { %v811_v39 = vpop.f32.mrf.mxu1  ;;  %903 = vst [vmem:[%s1777_s3 + $0xb8] sm:$0xff] %v871_v36  ;;  %v810_v41 = vadd.f32 %v809_v35, %v585_v37 }
 0x166   :  { %v589_v42 = vpop.f32.mrf.mxu0 }
 0x167   :  { %v814_v43 = vpop.f32.mrf.mxu1  ;;  %v872_v44 = vmax.f32 %v810_v41, 0.0  ;;  %v590_v45 = vadd.f32 %v589_v42, %v366_v40 }
 0x168   :  { %v591_v46 = vpop.f32.mrf.mxu0 }
 0x169   :  { %v816_v47 = vpop.f32.mrf.mxu1  ;;  %904 = vst [vmem:[%s1777_s3 + $0xc0] sm:$0xff] %v872_v44  ;;  %v815_v49 = vadd.f32 %v814_v43, %v590_v45 }
 0x16a   :  { %v594_v50 = vpop.f32.mrf.mxu0 }
 0x16b   :  { %v819_v51 = vpop.f32.mrf.mxu1  ;;  %v873_v52 = vmax.f32 %v815_v49, 0.0  ;;  %v595_v53 = vadd.f32 %v594_v50, %v371_v48 }
 0x16c   :  { %v596_v54 = vpop.f32.mrf.mxu0 }
 0x16d   :  { %v821_v55 = vpop.f32.mrf.mxu1  ;;  %905 = vst [vmem:[%s1777_s3 + $0xc8] sm:$0xff] %v873_v52  ;;  %v820_v57 = vadd.f32 %v819_v51, %v595_v53 }
 0x16e   :  { %v599_v58 = vpop.f32.mrf.mxu0 }
 0x16f   :  { %v824_v59 = vpop.f32.mrf.mxu1  ;;  %v874_v60 = vmax.f32 %v820_v57, 0.0  ;;  %v600_v61 = vadd.f32 %v599_v58, %v376_v56 }
 0x170   :  { %v601_v62 = vpop.f32.mrf.mxu0 }
 0x171   :  { %v826_v63 = vpop.f32.mrf.mxu1  ;;  %906 = vst [vmem:[%s1777_s3 + $0xd0] sm:$0xff] %v874_v60  ;;  %v825_v2 = vadd.f32 %v824_v59, %v600_v61 }
 0x172   :  { %v604_v3 = vpop.f32.mrf.mxu0 }
 0x173   :  { %v829_v4 = vpop.f32.mrf.mxu1  ;;  %v875_v5 = vmax.f32 %v825_v2, 0.0  ;;  %v605_v6 = vadd.f32 %v604_v3, %v381_v1 }
 0x174   :  { %v606_v7 = vpop.f32.mrf.mxu0 }
 0x175   :  { %v831_v0 = vpop.f32.mrf.mxu1  ;;  %907 = vst [vmem:[%s1777_s3 + $0xd8] sm:$0xff] %v875_v5  ;;  %v830_v9 = vadd.f32 %v829_v4, %v605_v6 }
 0x176   :  { %v609_v10 = vpop.f32.mrf.mxu0 }
 0x177   :  { %v834_v11 = vpop.f32.mrf.mxu1  ;;  %v876_v12 = vmax.f32 %v830_v9, 0.0  ;;  %v610_v13 = vadd.f32 %v609_v10, %v386_v8 }
 0x178   :  { %v611_v14 = vpop.f32.mrf.mxu0 }
 0x179   :  { %v836_v15 = vpop.f32.mrf.mxu1  ;;  %908 = vst [vmem:[%s1777_s3 + $0xe0] sm:$0xff] %v876_v12  ;;  %v835_v17 = vadd.f32 %v834_v11, %v610_v13 }
 0x17a   :  { %v614_v18 = vpop.f32.mrf.mxu0 }
 0x17b   :  { %v839_v19 = vpop.f32.mrf.mxu1  ;;  %v877_v20 = vmax.f32 %v835_v17, 0.0  ;;  %v615_v21 = vadd.f32 %v614_v18, %v391_v16 }
 0x17c   :  { %v616_v22 = vpop.f32.mrf.mxu0 }
 0x17d   :  { %v841_v23 = vpop.f32.mrf.mxu1  ;;  %909 = vst [vmem:[%s1777_s3 + $0xe8] sm:$0xff] %v877_v20  ;;  %v840_v25 = vadd.f32 %v839_v19, %v615_v21 }
 0x17e   :  { %v619_v26 = vpop.f32.mrf.mxu0 }
 0x17f   :  { %v844_v27 = vpop.f32.mrf.mxu1  ;;  %v878_v28 = vmax.f32 %v840_v25, 0.0  ;;  %v620_v29 = vadd.f32 %v619_v26, %v396_v24 }
 0x180   :  { %v621_v30 = vpop.f32.mrf.mxu0 }
 0x181   :  { %v846_v31 = vpop.f32.mrf.mxu1  ;;  %910 = vst [vmem:[%s1777_s3 + $0xf0] sm:$0xff] %v878_v28  ;;  %v845_v32 = vadd.f32 %v844_v27, %v620_v29 }
 0x183   :  { %v879_v33 = vmax.f32 %v845_v32, 0.0 }
 0x185   :  { %911 = vst [vmem:[%s1777_s3 + $0xf8] sm:$0xff] %v879_v33 }

</bundles_post_ra>
